<compile_context>
chip_gen: v7x
topology: tpu7x:2x2x1
jax: 0.10.0
libtpu: 0.0.40
codegen_flags: <defaults>
</compile_context>

<pallas_src>
import math

import jax
import jax.numpy as jnp
from jax.experimental import pallas as pl
from jax.experimental.pallas import tpu as pltpu


def _affine_kernel(x_ref, scale_ref, shift_ref, o_ref):
    # HBM-bound; the f32 VPU FMA is free. Params broadcast as (1, ct) or (rt, 1).
    x = x_ref[...].astype(jnp.float32)
    o_ref[...] = (x * scale_ref[...] + shift_ref[...]).astype(o_ref.dtype)


def _cdiv(a, b):
    return -(-a // b)


def _round_down(v, m):
    return (v // m) * m


def _round_up(v, m):
    return _cdiv(v, m) * m


def _vmem_budgets():
    """(target bytes for all double-buffered blocks, compiler vmem limit)."""
    phys = 64 * 1024 * 1024
    try:
        phys = getattr(pltpu.get_tpu_info(), "vmem_capacity_bytes", phys)
    except Exception:
        pass
    if phys <= 96 * 1024 * 1024:          # v7x: 64 MiB physical per TensorCore
        return 36 * 1024 * 1024, 48 * 1024 * 1024
    return 48 * 1024 * 1024, 64 * 1024 * 1024   # v5e / v6e: 128 MiB physical


def frozen_batch_norm_2d(x, weight, bias, running_mean, running_var, *,
                         eps=1e-5, vmem_target_bytes=None):
    """FrozenBatchNorm2d forward. x: (N, C, H, W); params: (C,)."""
    N, C, H, W = x.shape
    hw = H * W
    dtype = x.dtype
    itemsize = jnp.dtype(dtype).itemsize
    sub = {1: 32, 2: 16}.get(itemsize, 8)        # sublane granularity

    vmem_target, vmem_limit = _vmem_budgets()
    if vmem_target_bytes is not None:            # test hook: force small tiles
        vmem_target = vmem_target_bytes

    # Fold the frozen statistics once (O(C)); keep them in float32.
    f32 = jnp.float32
    scale_c = weight.astype(f32) * jax.lax.rsqrt(running_var.astype(f32) +
                                                 jnp.float32(eps))
    shift_c = bias.astype(f32) - running_mean.astype(f32) * scale_c

    min_col = 512                                # never collapse tiles to 128 lanes
    use_layout_b = (hw % 128) != 0

    if use_layout_b:
        # Layout B: (N, C*H*W) slab keeps stores lane-dense for 7x7/14x14/...
        # maps. Per-channel params are broadcast to a single (1, C*H*W) row.
        rows, cols = N, C * hw
        x2d = x.reshape(rows, cols)
        # TODO(synk): expand the (C,) params inside the kernel (jnp.repeat of a
        # (1, col_tile // hw) block) once non-128-aligned minor-dim reshapes
        # lower dependably in Mosaic; until then the broadcast is materialized
        # once and each column block of it is DMA'd exactly once.
        scale2d = jnp.repeat(scale_c, hw).reshape(1, cols)
        shift2d = jnp.repeat(shift_c, hw).reshape(1, cols)

        row_tile = rows if rows <= sub else sub
        # VMEM per column element (double-buffered): x + out blocks plus the
        # two f32 param rows (counted at 8 padded sublanes to be safe).
        per_col = 4 * row_tile * itemsize + 4 * 8 * 4
        col_tile = _round_down(max(vmem_target // per_col, min_col), 128)
        lcm = (128 * hw) // math.gcd(128, hw)
        if lcm <= col_tile:                      # channel-aligned tiles when cheap
            col_tile = max(_round_down(col_tile, lcm), min_col)
        if cols <= col_tile:
            col_tile = cols
        row_tiles = _cdiv(rows, row_tile)
        col_tiles = _cdiv(cols, col_tile)
        # Keep >= 2 parallel grid points for v7x's 2 TensorCores.
        if row_tiles * col_tiles == 1 and rows * cols * itemsize >= (1 << 20):
            if cols >= 2 * min_col:
                col_tile = max(min_col, _round_up(_cdiv(cols, 2), 128))
                col_tiles = _cdiv(cols, col_tile)
            elif rows >= 2 * sub:
                row_tile = _round_up(_cdiv(rows, 2), sub)
                row_tiles = _cdiv(rows, row_tile)

        # Column axis outermost: the (0, j) param blocks are fetched once per
        # column tile no matter how many row tiles there are.
        grid = (col_tiles, row_tiles)
        x_spec = pl.BlockSpec((row_tile, col_tile), lambda j, i: (i, j))
        out_spec = pl.BlockSpec((row_tile, col_tile), lambda j, i: (i, j))
        p_spec = pl.BlockSpec((1, col_tile), lambda j, i: (0, j))
    else:
        # Layout A: (N*C, H*W) slab; hw is a multiple of 128 so every store is
        # lane-dense. Params are true per-row (n*C + c) float32 columns.
        rows, cols = N * C, hw
        x2d = x.reshape(rows, cols)
        scale2d = jnp.broadcast_to(scale_c[None, :], (N, C)).reshape(rows, 1)
        shift2d = jnp.broadcast_to(shift_c[None, :], (N, C)).reshape(rows, 1)

        col_cap = _round_down(max(vmem_target // (4 * sub * itemsize), min_col), 128)
        col_tile = cols if cols <= col_cap else col_cap
        # VMEM per row (double-buffered): x + out blocks plus the two (rt, 1)
        # f32 param columns (counted at 128 padded lanes to be safe).
        per_row = 4 * col_tile * itemsize + 4 * 128 * 4
        row_cap = max(vmem_target // per_row, sub)
        row_tile = rows if rows <= row_cap else max(sub, _round_down(row_cap, sub))
        row_tiles = _cdiv(rows, row_tile)
        col_tiles = _cdiv(cols, col_tile)
        if row_tiles * col_tiles == 1 and rows * cols * itemsize >= (1 << 20):
            if rows >= 2 * sub:
                row_tile = _round_up(_cdiv(rows, 2), sub)
                row_tiles = _cdiv(rows, row_tile)
            elif cols >= 2 * min_col:
                col_tile = max(min_col, _round_up(_cdiv(cols, 2), 128))
                col_tiles = _cdiv(cols, col_tile)

        # Row axis outermost: the (i, 0) param blocks are fetched once per row tile.
        grid = (row_tiles, col_tiles)
        x_spec = pl.BlockSpec((row_tile, col_tile), lambda i, j: (i, j))
        out_spec = pl.BlockSpec((row_tile, col_tile), lambda i, j: (i, j))
        p_spec = pl.BlockSpec((row_tile, 1), lambda i, j: (i, 0))

    out2d = pl.pallas_call(
        _affine_kernel,
        out_shape=jax.ShapeDtypeStruct((rows, cols), dtype),
        grid_spec=pltpu.PrefetchScalarGridSpec(
            num_scalar_prefetch=0,
            grid=grid,
            in_specs=[x_spec, p_spec, p_spec],
            out_specs=out_spec,
        ),
        compiler_params=pltpu.CompilerParams(
            dimension_semantics=("parallel", "parallel"),
            vmem_limit_bytes=vmem_limit,
        ),
        # TODO(synk): add input_output_aliases={0: 0} when callers no longer
        # need x. Footprint-only optimization: it saves the output HBM
        # allocation but not any HBM bandwidth.
    )(x2d, scale2d, shift2d)

    return out2d.reshape(N, C, H, W)


def _reference(x, weight, bias, running_mean, running_var, eps=1e-5):
    f32 = jnp.float32
    w = weight.reshape(1, -1, 1, 1).astype(f32)
    b = bias.reshape(1, -1, 1, 1).astype(f32)
    rv = running_var.reshape(1, -1, 1, 1).astype(f32)
    rm = running_mean.reshape(1, -1, 1, 1).astype(f32)
    scale = w * jax.lax.rsqrt(rv + jnp.float32(eps))
    bias_ = b - rm * scale
    return x.astype(f32) * scale + bias_


def _run_case(key, N, C, H, W, dtype=jnp.float32, vmem_target_bytes=None,
              atol=1e-5, rtol=1e-5):
    kx, kw, kb, km, kv = jax.random.split(key, 5)
    x = jax.random.normal(kx, (N, C, H, W), dtype=jnp.float32).astype(dtype)
    weight = 1.0 + 0.1 * jax.random.normal(kw, (C,), dtype=jnp.float32)
    bias = 0.1 * jax.random.normal(kb, (C,), dtype=jnp.float32)
    running_mean = 0.1 * jax.random.normal(km, (C,), dtype=jnp.float32)
    running_var = 1.0 + 0.1 * jnp.abs(jax.random.normal(kv, (C,), dtype=jnp.float32))

    out = frozen_batch_norm_2d(x, weight, bias, running_mean, running_var,
                               vmem_target_bytes=vmem_target_bytes)
    out = jax.block_until_ready(out)
    assert out.shape == (N, C, H, W)
    assert out.dtype == dtype

    ref = _reference(x, weight, bias, running_mean, running_var)
    ok = jnp.allclose(out.astype(jnp.float32), ref, atol=atol, rtol=rtol)
    assert bool(ok), f"mismatch vs reference for shape {(N, C, H, W)} {dtype}"


if __name__ == "__main__":
    keys = jax.random.split(jax.random.PRNGKey(0), 7)
    # Layout A: hw multiple of 128.
    _run_case(keys[0], N=2, C=4, H=16, W=16)
    # Layout B: 7x7 maps, lane-dense (N, C*hw) slab, full-width column tile.
    _run_case(keys[1], N=2, C=128, H=7, W=7)
    # Layout B with C*hw not a multiple of 128 (new selector path).
    _run_case(keys[2], N=2, C=3, H=7, W=7)
    # Layout B, forced-small tiles -> multiple column tiles + masked edge tile.
    _run_case(keys[3], N=2, C=20, H=7, W=7, vmem_target_bytes=12 * 1024)
    # Layout A, forced-small tiles -> multiple row tiles + masked edge tile.
    _run_case(keys[4], N=2, C=13, H=16, W=24, vmem_target_bytes=64 * 1024)
    # Layout A, >=1 MiB tensor in a single block -> split for 2 TensorCores.
    _run_case(keys[5], N=2, C=128, H=32, W=32)
    # bf16 activations: params stay f32, FMA in f32, output cast back to bf16.
    _run_case(keys[6], N=2, C=128, H=7, W=7, dtype=jnp.bfloat16,
              atol=2e-2, rtol=2e-2)
    print("KERNEL_OK")
</pallas_src>

<mosaic_0001>
module attributes {stable_mosaic.version = 11 : i64} {
  func.func @_affine_kernel(%arg0: i32, %arg1: i32, %arg2: memref<8x256xf32, #tpu.memory_space<vmem>>, %arg3: memref<8x1xf32, #tpu.memory_space<vmem>>, %arg4: memref<8x1xf32, #tpu.memory_space<vmem>>, %arg5: memref<8x256xf32, #tpu.memory_space<vmem>>) attributes {dimension_semantics = [#tpu.dimension_semantics<parallel>, #tpu.dimension_semantics<parallel>], iteration_bounds = array<i64: 1, 1>, scalar_prefetch = 0 : i64, scratch_operands = 0 : i64, tpu.core_type = #tpu.core_type<tc>, window_params = [{transform_indices = @transform_0, window_bounds = array<i64: 8, 256>}, {transform_indices = @transform_1, window_bounds = array<i64: 8, 1>}, {transform_indices = @transform_2, window_bounds = array<i64: 8, 1>}, {transform_indices = @transform_3, window_bounds = array<i64: 8, 256>}]} {
    %c0 = arith.constant 0 : index
    %c0_0 = arith.constant 0 : index
    %0 = vector.load %arg2[%c0, %c0_0] : memref<8x256xf32, #tpu.memory_space<vmem>>, vector<8x256xf32>
    %c0_1 = arith.constant 0 : index
    %c0_2 = arith.constant 0 : index
    %1 = vector.load %arg3[%c0_1, %c0_2] : memref<8x1xf32, #tpu.memory_space<vmem>>, vector<8x1xf32>
    %2 = vector.broadcast %1 : vector<8x1xf32> to vector<8x256xf32>
    %3 = arith.mulf %0, %2 : vector<8x256xf32>
    %c0_3 = arith.constant 0 : index
    %c0_4 = arith.constant 0 : index
    %4 = vector.load %arg4[%c0_3, %c0_4] : memref<8x1xf32, #tpu.memory_space<vmem>>, vector<8x1xf32>
    %5 = vector.broadcast %4 : vector<8x1xf32> to vector<8x256xf32>
    %6 = arith.addf %3, %5 : vector<8x256xf32>
    %c0_5 = arith.constant 0 : index
    %c0_6 = arith.constant 0 : index
    %7 = vector.load %arg5[%c0_5, %c0_6] : memref<8x256xf32, #tpu.memory_space<vmem>>, vector<8x256xf32>
    tpu.vector_store %arg5[%c0_5, %c0_6], %6 {strides = array<i32>} : memref<8x256xf32, #tpu.memory_space<vmem>>, vector<8x256xf32>,
    return
  }
  func.func @transform_0(%arg0: i32, %arg1: i32) -> (i32, i32) {
    %c0_i32 = arith.constant 0 : i32
    return %arg0, %arg1 : i32, i32
  }
  func.func @transform_1(%arg0: i32, %arg1: i32) -> (i32, i32) {
    %c0_i32 = arith.constant 0 : i32
    %c0_i32_0 = arith.constant 0 : i32
    return %arg0, %c0_i32 : i32, i32
  }
  func.func @transform_2(%arg0: i32, %arg1: i32) -> (i32, i32) {
    %c0_i32 = arith.constant 0 : i32
    %c0_i32_0 = arith.constant 0 : i32
    return %arg0, %c0_i32 : i32, i32
  }
  func.func @transform_3(%arg0: i32, %arg1: i32) -> (i32, i32) {
    %c0_i32 = arith.constant 0 : i32
    return %arg0, %arg1 : i32, i32
  }
}

</mosaic_0001>

<bundles_post_ra>
// kernel: tpu_custom_call.1
= control target key start
LH: loop header
LB: loop body
LE: loop exit
PB: predicated region body
PF: predicated region fallthrough
CT: control target
= control target key end

     0   :  { %s122_s0 = inlined_call_operand.vmem [shape: f32[8,256], index: 0, kind: input, shape index: {}]   ;;  %s123_s1 = inlined_call_operand.vmem [shape: f32[8,1], index: 1, kind: input, shape index: {}]   ;;  %s124_s2 = inlined_call_operand.vmem [shape: f32[8,1], index: 2, kind: input, shape index: {}]   ;;  %s125_s3 = inlined_call_operand.hbm [shape: f32[8,256], index: 3, kind: output, shape index: {}]  }
   0x1   :  { %v17_v0 = vld [vmem:[%s123_s1] sm:$0xff] }
   0x2   :  { %8 = vsyncpa [#allocation3], 0  ;;  %v76_v1 = vmov 0   ;;  %v25_v2 = vld [vmem:[%s124_s2] sm:$0xff]  ;;  %v16_v5 = vld [vmem:[%s122_s0 + $0x8] sm:$0xff]  ;;  %s77_s20 = smov [#allocation2]  }
   0x3   :  { %51 = vset.pattern.permute.xlu0 %v76_v1  ;;  %v15_v4 = vld [vmem:[%s122_s0] sm:$0xff]  ;;  %s41_s1 = sshll.u32 %s77_s20, 4  ;;  %s42_s1 = int_to_ptr.vmem [resolvable:$true] %s41_s1 }
   0x4   :  { %20 = vperm.xlu0 %51, %v17_v0   ;;  %s52_s2 = scalar_lea.vmem %s42_s1, 256  ;;  %p57_p1 = scmp.lt.s32.totalorder %s42_s1, %s42_s1 }
   0x5   :  { %p53_p0 = scmp.ne.s32.totalorder %s42_s1, %s52_s2  ;;  %p58_p2 = scmp.lt.s32.totalorder %s52_s2, %s52_s2 }
   0x7   :  { %p59_p3 = por %p58_p2, %p57_p1 }
   0x8   :  { %28 = vperm.xlu0 %51, %v25_v2  }
   0x9   :  { %p60_p4 = pnand %p59_p3, %p53_p0 }
  0x83   :  { %v21_v3 = vpop.permute.xlu0 %20 }
  0x84   :  { %v23_v6 = vmul.f32 %v21_v3, %v15_v4  ;;  %v24_v7 = vmul.f32 %v21_v3, %v16_v5 }
  0x87   :  { %v29_v8 = vpop.permute.xlu0 %28 }
  0x88   :  { %v31_v9 = vadd.f32 %v29_v8, %v23_v6  ;;  %v32_v10 = vadd.f32 %v29_v8, %v24_v7 }
  0x8a   :  { %33 = vst [vmem:[#allocation2] sm:$0xff] %v31_v9  ;;  %34 = vst [vmem:[#allocation2 + $0x8] sm:$0xff] %v32_v10 }
  0x8b   :  { %63 = shalt.err (!%p60_p4)
}
  0x8c   :  { %s64_s0 = scalar_lea.hbm %s125_s3, 256 }
  0x8d   :  { %p65_p5 = scmp.ne.s32.totalorder %s125_s3, %s64_s0  ;;  %p68_p6 = scmp.lt.u32.totalorder %s64_s0, %s125_s3 }
  0x8f   :  { %p70_p7 = pnand %p68_p6, %p65_p5 }
  0x91   :  { %73 = shalt.err (!%p70_p7)
}
  0x92   :  { %44 = dma.vmem_to_hbm [thread:$0]  %s42_s1, 256, %s125_s3, [#allocation3]  }
  0x93   :  { %74 = dma.done.wait [#allocation3], 256  }
  0x94   :  { %75 = vsyncadd [#allocation3], 4294967040 }
  0x95   :  { %48 = vsyncpa [#allocation3], 1 }

</bundles_post_ra>
